<compile_context>
chip_gen: v7x
topology: tpu7x:2x2x1
jax: 0.10.0
libtpu: 0.0.40
codegen_flags: <defaults>
</compile_context>

<pallas_src>
import jax
import jax.numpy as jnp
from jax.experimental import pallas as pl
from jax.experimental.pallas import tpu as pltpu


def _se_kernel(x_ref, w1_ref, b1_ref, w2_ref, b2_ref, o_ref):
    """SE block on a (Bn, C, HW) tile.

    Channels on sublanes, flattened spatial on lanes.  BN scales and the 1/HW
    mean factor are pre-folded into w1/w2, so the kernel works on the raw
    spatial sum and only adds biases.
    """
    x = x_ref[...]                                             # (Bn, C, HW), native dtype
    # Global spatial SUM (lane reduction), accumulate in f32.
    pooled = jnp.sum(x.astype(jnp.float32), axis=-1)           # (Bn, C)

    # 1x1 conv C -> C/r (BN1 scale and 1/HW folded into w1), bias, ReLU.
    h1 = jnp.dot(pooled, w1_ref[...], preferred_element_type=jnp.float32)
    h1 = jnp.maximum(h1 + b1_ref[...], 0.0)                    # (Bn, Cr)

    # 1x1 conv C/r -> C (BN2 scale folded into w2), bias, hsigmoid.
    h2 = jnp.dot(h1, w2_ref[...], preferred_element_type=jnp.float32)
    h2 = h2 + b2_ref[...]
    scale = jnp.clip(h2 + 3.0, 0.0, 6.0) * (1.0 / 6.0)         # (Bn, C)

    # Excitation: broadcast per-(n, c) scale over the HW lane axis; keep x in
    # its native dtype and cast only the tiny scale vector.
    o_ref[...] = (x * scale.astype(o_ref.dtype)[:, :, None]).astype(o_ref.dtype)


def _pick_batch_block(n, c, hw, itemsize, max_block_bytes=4 << 20):
    """Largest divisor of n whose (bn, c, hw) tile stays under max_block_bytes."""
    best = 1
    for bn in range(1, n + 1):
        if n % bn:
            continue
        if bn * c * hw * itemsize <= max_block_bytes:
            best = bn
    return best


def se_module_pallas(x_nchw, w1, w2, bn1, bn2, eps=1e-5):
    """SeModule forward (eval-mode BatchNorm).  NCHW in / NCHW out.

    x_nchw: (N, C, H, W).  w1: (C//r, C), w2: (C, C//r) 1x1-conv weights.
    bn1/bn2: dicts with gamma, beta, mean, var (shapes (C//r,), (C,)).
    """
    N, C, H, W = x_nchw.shape
    Cr = w1.shape[0]
    HW = H * W

    # Fold eval-mode BatchNorm into per-channel scale/bias, then fold the
    # scales (and the 1/HW mean factor) straight into the 1x1-conv weights.
    s1 = bn1["gamma"] / jnp.sqrt(bn1["var"] + eps)
    b1 = bn1["beta"] - bn1["mean"] * s1
    s2 = bn2["gamma"] / jnp.sqrt(bn2["var"] + eps)
    b2 = bn2["beta"] - bn2["mean"] * s2

    w1_eff = jnp.asarray(w1, jnp.float32).T * (s1 / HW)[None, :]   # (C, Cr)
    w2_eff = jnp.asarray(w2, jnp.float32).T * s2[None, :]          # (Cr, C)
    b1 = b1.reshape(1, Cr).astype(jnp.float32)
    b2 = b2.reshape(1, C).astype(jnp.float32)

    # NCHW -> (N, C, HW): contiguous trailing-dim merge, no data movement.
    x_nc_hw = x_nchw.reshape(N, C, HW)

    itemsize = x_nchw.dtype.itemsize
    Bn = _pick_batch_block(N, C, HW, itemsize)
    block_bytes = Bn * C * HW * itemsize
    param_bytes = 4 * (C * Cr + Cr * C + Cr + C)
    # input + output blocks, double-buffered, + params + compiler headroom.
    vmem_limit = int(min(max(4 * block_bytes + 4 * param_bytes + (4 << 20),
                             16 << 20),
                         64 << 20))

    out = pl.pallas_call(
        _se_kernel,
        out_shape=jax.ShapeDtypeStruct((N, C, HW), x_nchw.dtype),
        grid_spec=pltpu.PrefetchScalarGridSpec(
            num_scalar_prefetch=0,
            grid=(N // Bn,),
            in_specs=[
                pl.BlockSpec((Bn, C, HW), lambda n: (n, 0, 0)),
                pl.BlockSpec((C, Cr), lambda n: (0, 0)),
                pl.BlockSpec((1, Cr), lambda n: (0, 0)),
                pl.BlockSpec((Cr, C), lambda n: (0, 0)),
                pl.BlockSpec((1, C), lambda n: (0, 0)),
            ],
            out_specs=pl.BlockSpec((Bn, C, HW), lambda n: (n, 0, 0)),
        ),
        compiler_params=pltpu.CompilerParams(
            dimension_semantics=("parallel",),
            vmem_limit_bytes=vmem_limit,
        ),
    )(x_nc_hw, w1_eff, b1, w2_eff, b2)

    # (N, C, HW) -> NCHW: free reshape.
    return out.reshape(N, C, H, W)


def se_module_reference(x, w1, w2, bn1, bn2, eps=1e-5):
    """Pure-JAX reference (NCHW), eval-mode BN."""
    pooled = jnp.mean(x, axis=(2, 3))                              # (N, C)
    h1 = pooled @ w1.T                                             # (N, Cr)
    h1 = (h1 - bn1["mean"]) / jnp.sqrt(bn1["var"] + eps) * bn1["gamma"] + bn1["beta"]
    h1 = jnp.maximum(h1, 0.0)
    h2 = h1 @ w2.T                                                 # (N, C)
    h2 = (h2 - bn2["mean"]) / jnp.sqrt(bn2["var"] + eps) * bn2["gamma"] + bn2["beta"]
    scale = jnp.clip(h2 + 3.0, 0.0, 6.0) / 6.0
    return x * scale[:, :, None, None]


if __name__ == "__main__":
    key = jax.random.PRNGKey(0)
    k_x, k_w1, k_w2, k_g1, k_b1, k_m1, k_v1, k_g2, k_b2, k_m2, k_v2 = (
        jax.random.split(key, 11))

    N, C, H, W = 2, 16, 16, 16
    reduction = 4
    Cr = C // reduction

    x = jax.random.normal(k_x, (N, C, H, W), jnp.float32)

    # Conv2d 1x1 weights: (out, in, 1, 1) -> stored as (out, in).
    w1 = 0.1 * jax.random.normal(k_w1, (Cr, C), jnp.float32)
    w2 = 0.1 * jax.random.normal(k_w2, (C, Cr), jnp.float32)

    bn1 = dict(
        gamma=1.0 + 0.05 * jax.random.normal(k_g1, (Cr,), jnp.float32),
        beta=0.05 * jax.random.normal(k_b1, (Cr,), jnp.float32),
        mean=0.05 * jax.random.normal(k_m1, (Cr,), jnp.float32),
        var=1.0 + 0.1 * jnp.abs(jax.random.normal(k_v1, (Cr,), jnp.float32)),
    )
    bn2 = dict(
        gamma=1.0 + 0.05 * jax.random.normal(k_g2, (C,), jnp.float32),
        beta=0.05 * jax.random.normal(k_b2, (C,), jnp.float32),
        mean=0.05 * jax.random.normal(k_m2, (C,), jnp.float32),
        var=1.0 + 0.1 * jnp.abs(jax.random.normal(k_v2, (C,), jnp.float32)),
    )

    out = se_module_pallas(x, w1, w2, bn1, bn2)
    out = jax.block_until_ready(out)

    ref = se_module_reference(x, w1, w2, bn1, bn2)
    assert out.shape == x.shape
    assert jnp.allclose(out, ref, atol=1e-5, rtol=1e-5), "mismatch vs reference"

    print("KERNEL_OK")
</pallas_src>

<mosaic_0001>
module attributes {stable_mosaic.version = 11 : i64} {
  func.func @_se_kernel(%arg0: i32, %arg1: memref<2x16x256xf32, #tpu.memory_space<vmem>>, %arg2: memref<16x4xf32, #tpu.memory_space<vmem>>, %arg3: memref<1x4xf32, #tpu.memory_space<vmem>>, %arg4: memref<4x16xf32, #tpu.memory_space<vmem>>, %arg5: memref<1x16xf32, #tpu.memory_space<vmem>>, %arg6: memref<2x16x256xf32, #tpu.memory_space<vmem>>) attributes {dimension_semantics = [#tpu.dimension_semantics<parallel>], iteration_bounds = array<i64: 1>, scalar_prefetch = 0 : i64, scratch_operands = 0 : i64, tpu.core_type = #tpu.core_type<tc>, window_params = [{transform_indices = @transform_0, window_bounds = array<i64: 2, 16, 256>}, {pipeline_mode = #tpu.pipeline_mode<synchronous>, transform_indices = @transform_1, window_bounds = array<i64: 16, 4>}, {pipeline_mode = #tpu.pipeline_mode<synchronous>, transform_indices = @transform_2, window_bounds = array<i64: 1, 4>}, {pipeline_mode = #tpu.pipeline_mode<synchronous>, transform_indices = @transform_3, window_bounds = array<i64: 4, 16>}, {pipeline_mode = #tpu.pipeline_mode<synchronous>, transform_indices = @transform_4, window_bounds = array<i64: 1, 16>}, {transform_indices = @transform_5, window_bounds = array<i64: 2, 16, 256>}]} {
    %c0 = arith.constant 0 : index
    %c0_0 = arith.constant 0 : index
    %c0_1 = arith.constant 0 : index
    %0 = vector.load %arg1[%c0, %c0_0, %c0_1] : memref<2x16x256xf32, #tpu.memory_space<vmem>>, vector<2x16x256xf32>
    %cst = arith.constant dense<0.000000e+00> : vector<2x16xf32>
    %1 = vector.multi_reduction <add>, %0, %cst [2] : vector<2x16x256xf32> to vector<2x16xf32>
    %c0_2 = arith.constant 0 : index
    %c0_3 = arith.constant 0 : index
    %2 = vector.load %arg2[%c0_2, %c0_3] : memref<16x4xf32, #tpu.memory_space<vmem>>, vector<16x4xf32>
    %cst_4 = arith.constant dense<0.000000e+00> : vector<2x4xf32>
    %3 = tpu.matmul %1, %2, %cst_4 {dimension_numbers = #tpu.dot_dimension_numbers<[1], [0], [0], [1], [0, 0, 1, 1], [], []>} : vector<2x16xf32>, vector<16x4xf32>, vector<2x4xf32> -> vector<2x4xf32>
    %c0_5 = arith.constant 0 : index
    %c0_6 = arith.constant 0 : index
    %4 = vector.load %arg3[%c0_5, %c0_6] : memref<1x4xf32, #tpu.memory_space<vmem>>, vector<1x4xf32>
    %5 = vector.broadcast %4 : vector<1x4xf32> to vector<2x4xf32>
    %6 = arith.addf %3, %5 : vector<2x4xf32>
    %cst_7 = arith.constant 0.000000e+00 : f32
    %7 = vector.broadcast %cst_7 : f32 to vector<2x4xf32>
    %8 = arith.maximumf %6, %7 : vector<2x4xf32>
    %c0_8 = arith.constant 0 : index
    %c0_9 = arith.constant 0 : index
    %9 = vector.load %arg4[%c0_8, %c0_9] : memref<4x16xf32, #tpu.memory_space<vmem>>, vector<4x16xf32>
    %cst_10 = arith.constant dense<0.000000e+00> : vector<2x16xf32>
    %10 = tpu.matmul %8, %9, %cst_10 {dimension_numbers = #tpu.dot_dimension_numbers<[1], [0], [0], [1], [0, 0, 1, 1], [], []>} : vector<2x4xf32>, vector<4x16xf32>, vector<2x16xf32> -> vector<2x16xf32>
    %c0_11 = arith.constant 0 : index
    %c0_12 = arith.constant 0 : index
    %11 = vector.load %arg5[%c0_11, %c0_12] : memref<1x16xf32, #tpu.memory_space<vmem>>, vector<1x16xf32>
    %12 = vector.broadcast %11 : vector<1x16xf32> to vector<2x16xf32>
    %13 = arith.addf %10, %12 : vector<2x16xf32>
    %cst_13 = arith.constant 3.000000e+00 : f32
    %14 = vector.broadcast %cst_13 : f32 to vector<2x16xf32>
    %15 = arith.addf %13, %14 : vector<2x16xf32>
    %cst_14 = arith.constant 0.000000e+00 : f32
    %cst_15 = arith.constant 6.000000e+00 : f32
    %16 = vector.broadcast %cst_14 : f32 to vector<2x16xf32>
    %17 = arith.maximumf %16, %15 : vector<2x16xf32>
    %18 = vector.broadcast %cst_15 : f32 to vector<2x16xf32>
    %19 = arith.minimumf %18, %17 : vector<2x16xf32>
    %cst_16 = arith.constant 0.166666672 : f32
    %20 = vector.broadcast %cst_16 : f32 to vector<2x16xf32>
    %21 = arith.mulf %19, %20 : vector<2x16xf32>
    %22 = vector.shape_cast %21 : vector<2x16xf32> to vector<2x16x1xf32>
    %23 = vector.broadcast %22 : vector<2x16x1xf32> to vector<2x16x256xf32>
    %24 = arith.mulf %0, %23 : vector<2x16x256xf32>
    %c0_17 = arith.constant 0 : index
    %c0_18 = arith.constant 0 : index
    %c0_19 = arith.constant 0 : index
    %25 = vector.load %arg6[%c0_17, %c0_18, %c0_19] : memref<2x16x256xf32, #tpu.memory_space<vmem>>, vector<2x16x256xf32>
    tpu.vector_store %arg6[%c0_17, %c0_18, %c0_19], %24 {strides = array<i32>} : memref<2x16x256xf32, #tpu.memory_space<vmem>>, vector<2x16x256xf32>,
    return
  }
  func.func @transform_0(%arg0: i32) -> (i32, i32, i32) {
    %c0_i32 = arith.constant 0 : i32
    %c0_i32_0 = arith.constant 0 : i32
    %c0_i32_1 = arith.constant 0 : i32
    return %arg0, %c0_i32, %c0_i32_0 : i32, i32, i32
  }
  func.func @transform_1(%arg0: i32) -> (i32, i32) {
    %c0_i32 = arith.constant 0 : i32
    %c0_i32_0 = arith.constant 0 : i32
    %c0_i32_1 = arith.constant 0 : i32
    return %c0_i32, %c0_i32_0 : i32, i32
  }
  func.func @transform_2(%arg0: i32) -> (i32, i32) {
    %c0_i32 = arith.constant 0 : i32
    %c0_i32_0 = arith.constant 0 : i32
    %c0_i32_1 = arith.constant 0 : i32
    return %c0_i32, %c0_i32_0 : i32, i32
  }
  func.func @transform_3(%arg0: i32) -> (i32, i32) {
    %c0_i32 = arith.constant 0 : i32
    %c0_i32_0 = arith.constant 0 : i32
    %c0_i32_1 = arith.constant 0 : i32
    return %c0_i32, %c0_i32_0 : i32, i32
  }
  func.func @transform_4(%arg0: i32) -> (i32, i32) {
    %c0_i32 = arith.constant 0 : i32
    %c0_i32_0 = arith.constant 0 : i32
    %c0_i32_1 = arith.constant 0 : i32
    return %c0_i32, %c0_i32_0 : i32, i32
  }
  func.func @transform_5(%arg0: i32) -> (i32, i32, i32) {
    %c0_i32 = arith.constant 0 : i32
    %c0_i32_0 = arith.constant 0 : i32
    %c0_i32_1 = arith.constant 0 : i32
    return %arg0, %c0_i32, %c0_i32_0 : i32, i32, i32
  }
}

</mosaic_0001>

<bundles_post_ra>
// kernel: tpu_custom_call.1
= control target key start
LH: loop header
LB: loop body
LE: loop exit
PB: predicated region body
PF: predicated region fallthrough
CT: control target
= control target key end

     0   :  { %10 = vsyncpa [#allocation3], 0  ;;  %s505_s0 = inlined_call_operand.hbm [shape: f32[2,16,256], index: 0, kind: input, shape index: {}]   ;;  %s506_s1 = inlined_call_operand.vmem [shape: f32[16,4], index: 1, kind: input, shape index: {}]   ;;  %s507_s2 = inlined_call_operand.vmem [shape: f32[1,4], index: 2, kind: input, shape index: {}]   ;;  %s508_s3 = inlined_call_operand.vmem [shape: f32[4,16], index: 3, kind: input, shape index: {}]   ;;  %s509_s4 = inlined_call_operand.vmem [shape: f32[1,16], index: 4, kind: input, shape index: {}]   ;;  %s510_s5 = inlined_call_operand.hbm [shape: f32[2,16,256], index: 5, kind: output, shape index: {}]  }
   0x1   :  { %11 = vsyncpa [#allocation4], 0  ;;  %s391_s18 = smov [#allocation2]   ;;  %s343_s22 = scalar_lea.hbm %s505_s0, 1024 }
   0x2   :  { %s17_s19 = sshll.u32 %s391_s18, 4  ;;  %p344_p0 = scmp.ne.s32.totalorder %s505_s0, %s343_s22  ;;  %s18_s19 = int_to_ptr.vmem [resolvable:$true] %s17_s19 }
   0x3   :  { %p347_p1 = scmp.lt.u32.totalorder %s343_s22, %s505_s0 }
   0x5   :  { %p349_p2 = pnand %p347_p1, %p344_p0 }
   0x7   :  { %352 = shalt.err (!%p349_p2)
}
   0x8   :  { %s353_s27 = scalar_lea.vmem %s18_s19, 1024  ;;  %p358_p4 = scmp.lt.s32.totalorder %s18_s19, %s18_s19 }
   0x9   :  { %p354_p3 = scmp.ne.s32.totalorder %s18_s19, %s353_s27  ;;  %p359_p5 = scmp.lt.s32.totalorder %s353_s27, %s353_s27 }
   0xb   :  { %p360_p6 = por %p359_p5, %p358_p4 }
   0xd   :  { %p361_p7 = pnand %p360_p6, %p354_p3 }
   0xf   :  { %364 = shalt.err (!%p361_p7)
}
  0x10   :  { %s392_s28 = smov 256   ;;  %s393_s29 = smov 16  }
  0x11   :  { %23 = dma.hbm_to_vmem [thread:$0]  %s505_s0, 1024, %s18_s19, [#allocation3], %s392_s28, %s392_s28, %s393_s29  }
  0x12   :  { %387 = dma.done.wait [#allocation3], 1024  }
  0x13   :  { %388 = vsyncadd [#allocation3], 4294966272  ;;  %v443_v0 = vld [vmem:[#allocation2 + $0x20] sm:$0xff]  ;;  %v445_v1 = vld [vmem:[#allocation2 + $0x28] sm:$0xff]  ;;  %v394_v15 = vmov 0.0|0.0   ;;  %vm395_vm0 = vmmov 0   ;;  %v68_v17 = vlaneseq }
  0x14   :  { %v447_v2 = vld [vmem:[#allocation2] sm:$0xff]  ;;  %v49_v3 = vadd.f32 %v445_v1, %v443_v0  ;;  %v451_v4 = vld [vmem:[#allocation2 + $0x8] sm:$0xff]  ;;  %v453_v5 = vld [vmem:[#allocation2 + $0x30] sm:$0xff]  ;;  %333 = vmatprep.subr.bf16.mxu0 %v394_v15  ;;  %v396_v16 = vmov 0.0   ;;  %vm79_vm1 = vcmask 130112   ;;  %vm90_vm2 = vcmask 1041409  }
  0x15   :  { %v455_v6 = vld [vmem:[#allocation2 + $0x38] sm:$0xff]  ;;  %v43_v7 = vadd.f32 %v451_v4, %v447_v2  ;;  %v459_v8 = vld [vmem:[#allocation2 + $0x10] sm:$0xff]  ;;  %v55_v12 = vld [vmem:[%s506_s1] sm:$0xff]  ;;  %325 = vmatprep.mubr.msk.f32.mxu0 %vm395_vm0, %v396_v16  ;;  %328 = vmatprep.subr.mxu1 %v396_v16  ;;  %v69_v18 = vand.u32 127, %v68_v17  ;;  %v71_v19 = vshrl.u32 %v68_v17, 7  ;;  %vm92_vm3 = vcmask 130048  }
  0x16   :  { %v461_v9 = vld [vmem:[#allocation2 + $0x18] sm:$0xff]  ;;  %50 = vadd.xlane.f32.xlu1 %v49_v3  ;;  %v52_v10 = vadd.f32 %v455_v6, %v453_v5  ;;  %v56_v13 = vld [vmem:[%s506_s1 + $0x8] sm:$0xff]  ;;  %330 = vmatprep.mubr.msk.f32.mxu1 %vm395_vm0, %v396_v16  ;;  %v166_v34 = vld [vmem:[%s508_s3] sm:$0xf]  ;;  %vm178_vm4 = vcmask 1043456   ;;  %vm174_vm5 = vcmask 31744  }
  0x17   :  { %44 = vadd.xlane.f32.xlu0 %v43_v7  ;;  %v46_v11 = vadd.f32 %v461_v9, %v459_v8  ;;  %v334_v14 = vpack.c.bf16 %v56_v13, %v55_v12  ;;  %v74_v20 = vadd.s32 4294967288, %v69_v18  ;;  %v72_v22 = vsub.s32 %v69_v18, %v71_v19  ;;  %329 = vmatpush3.msk.msra.mxu1 %vm178_vm4, %v166_v34  ;;  %v311_v35 = vld [vmem:[%s507_s2] ss:$0 sm:$0xff]  ;;  %s397_s2 = smov [#allocation5]  }
  0x18   :  { %v313_v40 = vld [vmem:[%s509_s4] ss:$0 sm:$0xff]  ;;  %v258_v47 = vsub.s32 0, %v71_v19  ;;  %v269_v50 = vsub.s32 1, %v71_v19  ;;  %s299_s3 = sshll.u32 %s397_s2, 4  ;;  %s300_s3 = int_to_ptr.vmem [resolvable:$true] %s299_s3 }
  0x19   :  { %335 = vmatpush3.bf16.msra.mxu0 %v334_v14  ;;  %v77_v24 = vsub.s32 %v74_v20, %v71_v19  ;;  %s365_s4 = scalar_lea.vmem %s300_s3, 1024  ;;  %p370_p9 = scmp.lt.s32.totalorder %s300_s3, %s300_s3 }
  0x1a   :  { %53 = vadd.xlane.f32.xlu1 %v52_v10  ;;  %p366_p8 = scmp.ne.s32.totalorder %s300_s3, %s365_s4  ;;  %p371_p10 = scmp.lt.s32.totalorder %s365_s4, %s365_s4 }
  0x1b   :  { %47 = vadd.xlane.f32.xlu0 %v46_v11 }
  0x1c   :  { %p372_p11 = por %p371_p10, %p370_p9 }
  0x1e   :  { %p373_p12 = pnand %p372_p11, %p366_p8 }
  0xa3   :  { %v51_v21 = vpop.xlane.xlu1 %50 }
  0xa4   :  { %v45_v23 = vpop.xlane.xlu0 %44  ;;  %v84_v26 = vrot.slane %v51_v21, %v72_v22 }
  0xa5   :  { %v73_v29 = vrot.slane %v45_v23, %v72_v22 }
  0xa7   :  { %v54_v25 = vpop.xlane.xlu1 %53 }
  0xa8   :  { %v88_v27 = vrot.slane %v54_v25, %v77_v24  ;;  %v48_v28 = vpop.xlane.xlu0 %47 }
  0xa9   :  { %v78_v30 = vrot.slane %v48_v28, %v77_v24 }
  0xaa   :  { %v89_v31 = vsel %vm79_vm1, %v88_v27, %v84_v26 }
  0xab   :  { %v80_v32 = vsel %vm79_vm1, %v78_v30, %v73_v29 }
  0xac   :  { %v91_v33 = vsel %vm90_vm2, %v89_v31, %v80_v32 }
  0xad   :  { %326 = vmatmul.mubr.msk.f32.vlgmr.msra.gmra.mrb[0].mxu0 %vm92_vm3, %v91_v33 }
 0x180   :  { %v161_v36 = vpop.f32.mrb[0].mxu0 }
 0x181   :  { %v162_v37 = vadd.f32 %v311_v35, %v161_v36  ;;  %v327_v38 = vpop.f32.mrb[1].mxu0 }
 0x183   :  { %v165_v39 = vmax.f32 %v162_v37, 0.0 }
 0x185   :  { %331 = vmatmul.mubr.msk.f32.vlgmr.msra.gmra.mrb[0].mxu1 %vm174_vm5, %v165_v39 }
 0x258   :  { %v248_v41 = vpop.f32.mrb[0].mxu1 }
 0x259   :  { %v249_v42 = vadd.f32 %v313_v40, %v248_v41  ;;  %v332_v43 = vpop.f32.mrb[1].mxu1 }
 0x25b   :  { %v252_v44 = vadd.f32 3.0, %v249_v42 }
 0x25d   :  { %v253_v45 = vmax.f32 %v252_v44, 0.0 }
 0x25f   :  { %v254_v46 = vmin.f32 %v253_v45, 6.0 }
 0x261   :  { %v255_v48 = vmul.f32 0.16666667, %v254_v46 }
 0x263   :  { %v259_v49 = vrot.slane %v255_v48, %v258_v47  ;;  %v270_v51 = vrot.slane %v255_v48, %v269_v50 }
 0x265   :  { %265 = vbcast.lane.b32.xlu1 %v259_v49, 264  ;;  %261 = vbcast.lane.b32.xlu0 %v259_v49, 256 }
 0x269   :  { %272 = vbcast.lane.b32.xlu1 %v270_v51, 256 }
 0x26d   :  { %276 = vbcast.lane.b32.xlu1 %v270_v51, 264 }
 0x2d7   :  { %v266_v52 = vpop.permute.xlu1 %265  ;;  %v262_v53 = vpop.permute.xlu0 %261 }
 0x2d8   :  { %v280_v54 = vmul.f32 %v266_v52, %v459_v8  ;;  %v281_v55 = vmul.f32 %v266_v52, %v461_v9  ;;  %v278_v56 = vmul.f32 %v262_v53, %v447_v2  ;;  %v279_v57 = vmul.f32 %v262_v53, %v451_v4 }
 0x2da   :  { %288 = vst [vmem:[#allocation5 + $0x10] sm:$0xff] %v280_v54  ;;  %289 = vst [vmem:[#allocation5 + $0x18] sm:$0xff] %v281_v55 }
 0x2db   :  { %286 = vst [vmem:[#allocation5] sm:$0xff] %v278_v56  ;;  %287 = vst [vmem:[#allocation5 + $0x8] sm:$0xff] %v279_v57  ;;  %v273_v58 = vpop.permute.xlu1 %272 }
 0x2dc   :  { %v282_v59 = vmul.f32 %v273_v58, %v443_v0  ;;  %v283_v60 = vmul.f32 %v273_v58, %v445_v1 }
 0x2de   :  { %290 = vst [vmem:[#allocation5 + $0x20] sm:$0xff] %v282_v59  ;;  %291 = vst [vmem:[#allocation5 + $0x28] sm:$0xff] %v283_v60 }
 0x2df   :  { %v277_v61 = vpop.permute.xlu1 %276 }
 0x2e0   :  { %v284_v62 = vmul.f32 %v277_v61, %v453_v5  ;;  %v285_v63 = vmul.f32 %v277_v61, %v455_v6 }
 0x2e2   :  { %292 = vst [vmem:[#allocation5 + $0x30] sm:$0xff] %v284_v62  ;;  %293 = vst [vmem:[#allocation5 + $0x38] sm:$0xff] %v285_v63 }
 0x2e3   :  { %376 = shalt.err (!%p373_p12)
}
 0x2e4   :  { %s377_s17 = scalar_lea.hbm %s510_s5, 1024 }
 0x2e5   :  { %p378_p13 = scmp.ne.s32.totalorder %s510_s5, %s377_s17  ;;  %p381_p0 = scmp.lt.u32.totalorder %s377_s17, %s510_s5 }
 0x2e7   :  { %p383_p1 = pnand %p381_p0, %p378_p13 }
 0x2e9   :  { %386 = shalt.err (!%p383_p1)
}
 0x2ea   :  { %305 = dma.vmem_to_hbm [thread:$0]  %s300_s3, 1024, %s510_s5, [#allocation4], %s392_s28, %s392_s28, %s393_s29  }
 0x2eb   :  { %389 = dma.done.wait [#allocation4], 1024  }
 0x2ec   :  { %390 = vsyncadd [#allocation4], 4294966272 }
 0x2ed   :  { %309 = vsyncpa [#allocation3], 1 }
 0x2ee   :  { %310 = vsyncpa [#allocation4], 1 }

</bundles_post_ra>
